<compile_context>
chip_gen: v5e
topology: v5e:2x2
jax: 0.10.0
libtpu: 0.0.40
codegen_flags: <defaults>
</compile_context>

<pallas_src>
import jax
import jax.numpy as jnp
from jax.experimental import pallas as pl
from jax.experimental.pallas import tpu as pltpu

K = 3          # kernel size per spatial dim
PAD = K // 2   # circular padding on each side


def conv3d_mm_kernel(p_ref, w_ref, b_ref, o_ref):
    # p_ref: (1, KC, TM)    im2col patches (bf16), KC = 27 * Cin
    # w_ref: (Cout, KC)     flattened conv weights (bf16)
    # b_ref: (Cout, 1)      bias (f32)
    # o_ref: (1, Cout, TM)  output tile, lane-dense last dim
    acc = jnp.dot(w_ref[...], p_ref[0], preferred_element_type=jnp.float32)
    acc = acc + b_ref[...]                      # (Cout, 1) broadcast over lanes
    o_ref[0] = acc.astype(o_ref.dtype)


def _im2col_circular(x):
    """x: (N, Cin, D, H, W) -> (N, 27*Cin, D*H*W) circular-conv patch matrix."""
    N, Cin, D, H, W = x.shape
    taps = []
    for kd in range(K):
        for kh in range(K):
            for kw in range(K):
                # circular shift == reading the wrap-padded volume at tap (kd,kh,kw)
                taps.append(
                    jnp.roll(x, shift=(PAD - kd, PAD - kh, PAD - kw),
                             axis=(2, 3, 4)))
    p = jnp.stack(taps, axis=2)                 # (N, Cin, 27, D, H, W)
    return p.reshape(N, Cin * K * K * K, D * H * W)


def conv_block_forward(x_ncdhw, weight, bias):
    """x_ncdhw: (N, Cin, D, H, W); weight: (Cout, Cin, 3, 3, 3); bias: (Cout,)"""
    N, Cin, D, H, W = x_ncdhw.shape
    Cout = weight.shape[0]
    DHW = D * H * W
    KC = K * K * K * Cin

    # ---- wrapper-side staging (layout glue, not compute) ----
    patches = _im2col_circular(x_ncdhw).astype(jnp.bfloat16)     # (N, KC, DHW)
    # weight (Cout, Cin, kd, kh, kw) -> (Cout, Cin*27); row index = c*27 + tap,
    # matching the (Cin, tap) ordering produced by _im2col_circular.
    w_flat = weight.reshape(Cout, KC).astype(jnp.bfloat16)
    b_col = bias.reshape(Cout, 1).astype(jnp.float32)

    # Lane tile over the flattened spatial dim (keeps stores >=128 lanes wide).
    if DHW % 512 == 0:
        tm = 512
    elif DHW % 256 == 0:
        tm = 256
    elif DHW % 128 == 0:
        tm = 128
    else:
        tm = DHW
    grid = (N, DHW // tm)

    out = pl.pallas_call(
        conv3d_mm_kernel,
        out_shape=jax.ShapeDtypeStruct((N, Cout, DHW), x_ncdhw.dtype),
        grid_spec=pltpu.PrefetchScalarGridSpec(
            num_scalar_prefetch=0,
            grid=grid,
            in_specs=[
                pl.BlockSpec((1, KC, tm), lambda n, m: (n, 0, m)),
                pl.BlockSpec((Cout, KC), lambda n, m: (0, 0)),
                pl.BlockSpec((Cout, 1), lambda n, m: (0, 0)),
            ],
            out_specs=pl.BlockSpec((1, Cout, tm), lambda n, m: (n, 0, m)),
        ),
        compiler_params=pltpu.CompilerParams(
            dimension_semantics=("parallel", "parallel"),
            vmem_limit_bytes=32 * 1024 * 1024,
        ),
    )(patches, w_flat, b_col)

    # Output is already channel-first; only a reshape (no transpose) is needed.
    return out.reshape(N, Cout, D, H, W)


def reference_forward(x_ncdhw, weight, bias):
    x_pad = jnp.pad(
        x_ncdhw,
        ((0, 0), (0, 0), (PAD, PAD), (PAD, PAD), (PAD, PAD)),
        mode="wrap",
    )
    out = jax.lax.conv_general_dilated(
        x_pad, weight,
        window_strides=(1, 1, 1), padding="VALID",
        dimension_numbers=("NCDHW", "OIDHW", "NCDHW"),
        precision=jax.lax.Precision.HIGHEST,
    )
    return out + bias[None, :, None, None, None]


if __name__ == "__main__":
    # Small shapes consistent with the module: in_dim=4, out_dim=8, spatial=8
    N, Cin, Cout, D, H, W = 2, 4, 8, 8, 8, 8

    key = jax.random.PRNGKey(0)
    kx, kw, kb = jax.random.split(key, 3)
    x = jax.random.normal(kx, (N, Cin, D, H, W), dtype=jnp.float32)
    weight = 0.1 * jax.random.normal(kw, (Cout, Cin, K, K, K), dtype=jnp.float32)
    bias = 0.1 * jax.random.normal(kb, (Cout,), dtype=jnp.float32)

    out = jax.block_until_ready(conv_block_forward(x, weight, bias))
    ref = jax.block_until_ready(reference_forward(x, weight, bias))

    assert out.shape == (N, Cout, D, H, W), out.shape
    assert jnp.allclose(out, ref, atol=5e-2, rtol=5e-2), float(
        jnp.max(jnp.abs(out - ref)))
    print("KERNEL_OK")
</pallas_src>

<mosaic_0001>
module attributes {stable_mosaic.version = 11 : i64} {
  func.func @conv3d_mm_kernel(%arg0: i32, %arg1: i32, %arg2: memref<1x108x512xbf16, #tpu.memory_space<vmem>>, %arg3: memref<8x108xbf16, #tpu.memory_space<vmem>>, %arg4: memref<8x1xf32, #tpu.memory_space<vmem>>, %arg5: memref<1x8x512xf32, #tpu.memory_space<vmem>>) attributes {dimension_semantics = [#tpu.dimension_semantics<parallel>, #tpu.dimension_semantics<parallel>], iteration_bounds = array<i64: 2, 1>, scalar_prefetch = 0 : i64, scratch_operands = 0 : i64, tpu.core_type = #tpu.core_type<tc>, window_params = [{transform_indices = @transform_0, window_bounds = array<i64: 1, 108, 512>}, {pipeline_mode = #tpu.pipeline_mode<synchronous>, transform_indices = @transform_1, window_bounds = array<i64: 8, 108>}, {pipeline_mode = #tpu.pipeline_mode<synchronous>, transform_indices = @transform_2, window_bounds = array<i64: 8, 1>}, {transform_indices = @transform_3, window_bounds = array<i64: 1, 8, 512>}]} {
    %c0 = arith.constant 0 : index
    %c0_0 = arith.constant 0 : index
    %0 = vector.load %arg3[%c0, %c0_0] : memref<8x108xbf16, #tpu.memory_space<vmem>>, vector<8x108xbf16>
    %c0_1 = arith.constant 0 : index
    %c0_2 = arith.constant 0 : index
    %c0_3 = arith.constant 0 : index
    %1 = vector.load %arg2[%c0_1, %c0_2, %c0_3] : memref<1x108x512xbf16, #tpu.memory_space<vmem>>, vector<1x108x512xbf16>
    %2 = vector.shape_cast %1 : vector<1x108x512xbf16> to vector<108x512xbf16>
    %cst = arith.constant dense<0.000000e+00> : vector<8x512xf32>
    %3 = tpu.matmul %0, %2, %cst {dimension_numbers = #tpu.dot_dimension_numbers<[1], [0], [0], [1], [0, 0, 1, 1], [], []>} : vector<8x108xbf16>, vector<108x512xbf16>, vector<8x512xf32> -> vector<8x512xf32>
    %c0_4 = arith.constant 0 : index
    %c0_5 = arith.constant 0 : index
    %4 = vector.load %arg4[%c0_4, %c0_5] : memref<8x1xf32, #tpu.memory_space<vmem>>, vector<8x1xf32>
    %5 = vector.broadcast %4 : vector<8x1xf32> to vector<8x512xf32>
    %6 = arith.addf %3, %5 : vector<8x512xf32>
    %c0_6 = arith.constant 0 : index
    %c0_7 = arith.constant 0 : index
    %c0_8 = arith.constant 0 : index
    %7 = vector.load %arg5[%c0_6, %c0_7, %c0_8] : memref<1x8x512xf32, #tpu.memory_space<vmem>>, vector<1x8x512xf32>
    %8 = vector.shape_cast %7 : vector<1x8x512xf32> to vector<8x512xf32>
    %9 = vector.shape_cast %6 : vector<8x512xf32> to vector<1x8x512xf32>
    tpu.vector_store %arg5[%c0_6, %c0_7, %c0_8], %9 {strides = array<i32>} : memref<1x8x512xf32, #tpu.memory_space<vmem>>, vector<1x8x512xf32>,
    return
  }
  func.func @transform_0(%arg0: i32, %arg1: i32) -> (i32, i32, i32) {
    %c0_i32 = arith.constant 0 : i32
    %c0_i32_0 = arith.constant 0 : i32
    return %arg0, %c0_i32, %arg1 : i32, i32, i32
  }
  func.func @transform_1(%arg0: i32, %arg1: i32) -> (i32, i32) {
    %c0_i32 = arith.constant 0 : i32
    %c0_i32_0 = arith.constant 0 : i32
    %c0_i32_1 = arith.constant 0 : i32
    return %c0_i32, %c0_i32_0 : i32, i32
  }
  func.func @transform_2(%arg0: i32, %arg1: i32) -> (i32, i32) {
    %c0_i32 = arith.constant 0 : i32
    %c0_i32_0 = arith.constant 0 : i32
    %c0_i32_1 = arith.constant 0 : i32
    return %c0_i32, %c0_i32_0 : i32, i32
  }
  func.func @transform_3(%arg0: i32, %arg1: i32) -> (i32, i32, i32) {
    %c0_i32 = arith.constant 0 : i32
    %c0_i32_0 = arith.constant 0 : i32
    return %arg0, %c0_i32, %arg1 : i32, i32, i32
  }
}

</mosaic_0001>

<bundles_post_ra>
// kernel: tpu_custom_call.1
= control target key start
LH: loop header
LB: loop body
LE: loop exit
PB: predicated region body
PF: predicated region fallthrough
CT: control target
= control target key end

     0   :  { %8 = vsyncpa [#allocation3], 0  ;;  %s1021_s0 = inlined_call_operand.vmem [shape: bf16[2,108,512], index: 0, kind: input, shape index: {}]   ;;  %s1022_s1 = inlined_call_operand.vmem [shape: bf16[8,108], index: 1, kind: input, shape index: {}]   ;;  %s1023_s2 = inlined_call_operand.vmem [shape: f32[8,1], index: 2, kind: input, shape index: {}]   ;;  %s1024_s3 = inlined_call_operand.hbm [shape: f32[2,8,512], index: 3, kind: output, shape index: {}]  }
   0x1   :  { %10 = vsyncpa [#allocation3 + $0x1], 0  ;;  %s856_s12 = smov 0   ;;  %s858_s13 = smov 0  }
   0x2   :  { %s860_s14 = smov 0   ;;  %s862_s15 = smov 0  }
   0x3   :  { %s864_s16 = smov 0   ;;  %s866_s17 = smov 0  }
   0x4 LB: > { %s540_s18 = sadd.s32 4294967295, %s833_s17   ;;  %s541_s19 = sadd.s32 4294967294, %s833_s17   ;;  %s833_s17 = sphi %s866_s17, %s16_s17   ;;  %s829_s16 = sphi %s864_s16, %s1031_s16   ;;  %s825_s15 = sphi %s862_s15, %s1030_s15   ;;  %s821_s14 = sphi %s860_s14, %s1029_s14   ;;  %s817_s13 = sphi %s858_s13, %s1028_s13   ;;  %s813_s12 = sphi %s856_s12, %s1027_s12  }
   0x5   : > { %s28_s20 = sadd.s32 1, %s829_s16  ;;  %s107_s21 = sadd.s32 1, %s821_s14 }
   0x6   : > { %p30_p0 = scmp.ge.s32.totalorder %s28_s20, 2  ;;  %p117_p1 = scmp.ne.s32.totalorder %s821_s14, %s817_s13 }
   0x7   : > { %p118_p2 = scmp.eq.s32.totalorder %s540_s18, 1  ;;  %p123_p3 = scmp.ne.s32.totalorder %s817_s13, %s813_s12 }
   0x8   : > { %s1033_s20 = smov (%p30_p0, %s28_s20), 0  ;;  %p124_p5 = scmp.eq.s32.totalorder %s541_s19, 1 }
   0x9   : > { %p896_p4 = por %p118_p2, %p117_p1  ;;  %s102_s23 = ssub.s32 %s829_s16, %s1033_s20 }
   0xa   : > { %p544_p6 = scmp.ge.s32.totalorder %s833_s17, 1  ;;  %p105_p7 = scmp.eq.s32.totalorder %s102_s23, 0 }
   0xb   : > { %p903_p8 = por %p124_p5, %p123_p3  ;;  %p161_p9 = scmp.lt.s32.totalorder %s833_s17, 3 }
   0xc   : > { %s909_s25 = scalar_select %p105_p7, %s821_s14, %s107_s21  }
   0xd   : > { %p162_p10 = pnand %p544_p6, %p161_p9 }
   0xe   : > { %p190_p11 = scmp.lt.s32.totalorder (!%p162_p10), %s825_s15, 1  ;;  %s186_s8 = sand.u32 (!%p162_p10), 1, %s817_s13  }
   0xf   : > { %165 = sbr.rel (%p162_p10) target bundleno = 198 (0xc6), region = 32  ;;  %s545_s9 = sshll.u32 (!%p162_p10), %s186_s8, 5 }
  0x10   : > { %s696_s10 = sshll.u32 (!%p162_p10), %s825_s15, 5  ;;  %s188_s11 = scalar_lea.vmem (!%p162_p10), [#allocation2], %s545_s9 }
  0x11   : > { %s459_s21 = scalar_lea.hbm (!%p162_p10), %s1024_s3, %s696_s10  ;;  %s461_s23 = sshll.u32 (!%p162_p10), %s188_s11, 4  ;;  %s462_s23 = int_to_ptr.vmem [resolvable:$true] %s461_s23 }
  0x12   : > { %s775_s4 = scalar_lea.hbm (!%p162_p10), %s1024_s3, 64 }
  0x14   : > { %s191_s26 = scalar_select %p190_p11, %s825_s15, 1  ;;  %vm376_vm0 = vcmask 1045504   ;;  %v835_v21 = vmov 0   ;;  %v230_v26 = vld [vmem:[%s1023_s2] sm:$0xff]  ;;  %vm372_vm1 = vcmask 883712  }
  0x15   : > { %754 = vset.pattern.permute.xlu0 %v835_v21  ;;  %s446_s15 = scalar_lea.sflag [#allocation3], %s186_s8 }
  0x16   : > { %s697_s27 = smul.u32 224, %s191_s26  ;;  %233 = vperm.xlu0 %754, %v230_v26   ;;  %v201_v26 = vld [vmem:[%s1022_s1] sm:$0xf]  ;;  %s463_s26 = sshll.u32 %s459_s21, 4  ;;  %s464_s26 = int_to_ptr.hbm [resolvable:$true] %s463_s26 }
  0x18   : > { %s916_s30 = scalar_lea.vmem %s1021_s0, %s697_s27  ;;  %s769_s27 = sshra.s32 %s464_s26, 4  ;;  %s770_s27 = int_to_ptr.hbm [resolvable:$true] %s769_s27 }
  0x19   : > { %v645_v0 = vld [vmem:[%s916_s30 + $0xc0] sm:$0xf]  ;;  %v694_v1 = vld [vmem:[%s916_s30 + $0xcc] sm:$0x30]  ;;  %v692_v2 = vld [vmem:[%s916_s30 + $0xc4] sm:$0xf]  ;;  %p776_p1 = scmp.lt.s32.totalorder %s770_s27, %s1024_s3 }
  0x1a   : > { %v646_v3 = vor.u32 %v694_v1, %v645_v0  ;;  %v647_v4 = vld [vmem:[%s916_s30 + $0xd0] sm:$0x30]  ;;  %v653_v5 = vld [vmem:[%s916_s30 + $0xc8] sm:$0xf]  ;;  %v695_v6 = vld [vmem:[%s916_s30 + $0xd4] sm:$0x30] }
  0x1b   : > { %v650_v7 = vor.u32 %v692_v2, %v647_v4  ;;  %v654_v8 = vor.u32 %v695_v6, %v653_v5  ;;  %v693_v9 = vld [vmem:[%s916_s30 + $0xcc] sm:$0xf]  ;;  %v655_v10 = vld [vmem:[%s916_s30 + $0xd8] sm:$0x30]  ;;  %v629_v11 = vld [vmem:[%s916_s30 + $0xa0] sm:$0xf] }
  0x1c   : > { %v378_v12 = vsel %vm376_vm0, %v646_v3, 0  ;;  %v658_v13 = vor.u32 %v693_v9, %v655_v10  ;;  %v690_v14 = vld [vmem:[%s916_s30 + $0xac] sm:$0xf0]  ;;  %v688_v15 = vld [vmem:[%s916_s30 + $0xa4] sm:$0xf]  ;;  %s771_s28 = scalar_lea.hbm %s770_s27, 32 }
  0x1d   : > { %390 = vmatpush.bf16.msra.mxu0 %v378_v12  ;;  %v381_v16 = vsel %vm376_vm0, %v650_v7, 0  ;;  %v384_v17 = vsel %vm376_vm0, %v654_v8, 0  ;;  %v630_v18 = vor.u32 %v690_v14, %v629_v11  ;;  %v631_v19 = vld [vmem:[%s916_s30 + $0xb0] sm:$0xf0]  ;;  %v637_v20 = vld [vmem:[%s916_s30 + $0xa8] sm:$0xf]  ;;  %p772_p12 = scmp.ne.s32.totalorder %s770_s27, %s771_s28  ;;  %p777_p2 = scmp.lt.s32.totalorder %s775_s4, %s771_s28 }
  0x1e   : > { %403 = vmatpush.bf16.msra.mxu1 %v381_v16  ;;  %416 = vmatpush.bf16.msra.mxu2 %v384_v17  ;;  %v387_v22 = vsel %vm376_vm0, %v658_v13, 0  ;;  %v634_v23 = vor.u32 %v688_v15, %v631_v19  ;;  %v691_v24 = vld [vmem:[%s916_s30 + $0xb4] sm:$0xf0]  ;;  %v689_v25 = vld [vmem:[%s916_s30 + $0xac] sm:$0xf] }
  0x1f   : > { %429 = vmatpush.bf16.msra.mxu3 %v387_v22  ;;  %v638_v27 = vor.u32 %v691_v24, %v637_v20  ;;  %v639_v28 = vld [vmem:[%s916_s30 + $0xb8] sm:$0xf0]  ;;  %v613_v29 = vld [vmem:[%s916_s30 + $0x80] sm:$0xf]  ;;  %v686_v30 = vld [vmem:[%s916_s30 + $0x8c] sm:$0xf0]  ;;  %p773_p13 = pnand %p772_p12, %p896_p4  ;;  %p778_p3 = por %p777_p2, %p776_p1 }
  0x20   : > { %v642_v31 = vor.u32 %v689_v25, %v639_v28  ;;  %v684_v32 = vld [vmem:[%s916_s30 + $0x84] sm:$0xf]  ;;  %v615_v33 = vld [vmem:[%s916_s30 + $0x90] sm:$0xf0]  ;;  %v621_v34 = vld [vmem:[%s916_s30 + $0x88] sm:$0xf]  ;;  %v614_v35 = vor.u32 %v686_v30, %v613_v29 }
  0x21   : > { %391 = vmatpush.bf16.msra.mxu0 %v630_v18  ;;  %v687_v36 = vld [vmem:[%s916_s30 + $0x94] sm:$0xf0]  ;;  %v685_v37 = vld [vmem:[%s916_s30 + $0x8c] sm:$0xf]  ;;  %v623_v38 = vld [vmem:[%s916_s30 + $0x98] sm:$0xf0]  ;;  %v618_v39 = vor.u32 %v684_v32, %v615_v33  ;;  %p774_p0 = pneg %p773_p13 }
  0x22   : > { %404 = vmatpush.bf16.msra.mxu1 %v634_v23  ;;  %417 = vmatpush.bf16.msra.mxu2 %v638_v27  ;;  %v622_v40 = vor.u32 %v687_v36, %v621_v34  ;;  %v597_v41 = vld [vmem:[%s916_s30 + $0x60] sm:$0xf]  ;;  %v682_v42 = vld [vmem:[%s916_s30 + $0x6c] sm:$0xf0]  ;;  %v680_v43 = vld [vmem:[%s916_s30 + $0x64] sm:$0xf]  ;;  %v626_v44 = vor.u32 %v685_v37, %v623_v38 }
  0x23   : > { %430 = vmatpush.bf16.msra.mxu3 %v642_v31  ;;  %v599_v45 = vld [vmem:[%s916_s30 + $0x70] sm:$0xf0]  ;;  %v605_v46 = vld [vmem:[%s916_s30 + $0x68] sm:$0xf]  ;;  %v683_v47 = vld [vmem:[%s916_s30 + $0x74] sm:$0xf0]  ;;  %v598_v50 = vor.u32 %v682_v42, %v597_v41  ;;  %p779_p5 = pnand %p778_p3, %p774_p0 }
  0x24   : > { %v681_v48 = vld [vmem:[%s916_s30 + $0x6c] sm:$0xf]  ;;  %v607_v49 = vld [vmem:[%s916_s30 + $0x78] sm:$0xf0]  ;;  %v602_v51 = vor.u32 %v680_v43, %v599_v45  ;;  %v606_v52 = vor.u32 %v683_v47, %v605_v46  ;;  %v581_v53 = vld [vmem:[%s916_s30 + $0x40] sm:$0xf] }
  0x25   : > { %392 = vmatpush.bf16.msra.mxu0 %v614_v35  ;;  %v678_v54 = vld [vmem:[%s916_s30 + $0x4c] sm:$0xf0]  ;;  %v676_v55 = vld [vmem:[%s916_s30 + $0x44] sm:$0xf]  ;;  %v610_v56 = vor.u32 %v681_v48, %v607_v49  ;;  %v583_v57 = vld [vmem:[%s916_s30 + $0x50] sm:$0xf0] }
  0x26   : > { %405 = vmatpush.bf16.msra.mxu1 %v618_v39  ;;  %418 = vmatpush.bf16.msra.mxu2 %v622_v40  ;;  %v589_v58 = vld [vmem:[%s916_s30 + $0x48] sm:$0xf]  ;;  %v679_v59 = vld [vmem:[%s916_s30 + $0x54] sm:$0xf0]  ;;  %v677_v60 = vld [vmem:[%s916_s30 + $0x4c] sm:$0xf]  ;;  %v582_v62 = vor.u32 %v678_v54, %v581_v53  ;;  %v586_v63 = vor.u32 %v676_v55, %v583_v57 }
  0x27   : > { %431 = vmatpush.bf16.msra.mxu3 %v626_v44  ;;  %v591_v61 = vld [vmem:[%s916_s30 + $0x58] sm:$0xf0]  ;;  %v590_v0 = vor.u32 %v679_v59, %v589_v58  ;;  %v565_v1 = vld [vmem:[%s916_s30 + $0x20] sm:$0xf]  ;;  %v674_v2 = vld [vmem:[%s916_s30 + $0x2c] sm:$0xf0] }
  0x28   : > { %v672_v3 = vld [vmem:[%s916_s30 + $0x24] sm:$0xf]  ;;  %v594_v4 = vor.u32 %v677_v60, %v591_v61  ;;  %v567_v5 = vld [vmem:[%s916_s30 + $0x30] sm:$0xf0]  ;;  %v573_v6 = vld [vmem:[%s916_s30 + $0x28] sm:$0xf]  ;;  %v566_v10 = vor.u32 %v674_v2, %v565_v1 }
  0x29   : > { %393 = vmatpush.bf16.msra.mxu0 %v598_v50  ;;  %v675_v7 = vld [vmem:[%s916_s30 + $0x34] sm:$0xf0]  ;;  %v673_v8 = vld [vmem:[%s916_s30 + $0x2c] sm:$0xf]  ;;  %v575_v9 = vld [vmem:[%s916_s30 + $0x38] sm:$0xf0]  ;;  %v570_v11 = vor.u32 %v672_v3, %v567_v5 }
  0x2a   : > { %406 = vmatpush.bf16.msra.mxu1 %v602_v51  ;;  %419 = vmatpush.bf16.msra.mxu2 %v606_v52  ;;  %v574_v12 = vor.u32 %v675_v7, %v573_v6  ;;  %v549_v13 = vld [vmem:[%s916_s30] sm:$0xf]  ;;  %v670_v14 = vld [vmem:[%s916_s30 + $0xc] sm:$0xf0]  ;;  %v668_v15 = vld [vmem:[%s916_s30 + $0x4] sm:$0xf]  ;;  %v578_v16 = vor.u32 %v673_v8, %v575_v9 }
  0x2b   : > { %432 = vmatpush.bf16.msra.mxu3 %v610_v56  ;;  %v551_v17 = vld [vmem:[%s916_s30 + $0x10] sm:$0xf0]  ;;  %v557_v18 = vld [vmem:[%s916_s30 + $0x8] sm:$0xf]  ;;  %v671_v19 = vld [vmem:[%s916_s30 + $0x14] sm:$0xf0]  ;;  %v550_v22 = vor.u32 %v670_v14, %v549_v13 }
  0x2c   : > { %v669_v20 = vld [vmem:[%s916_s30 + $0xc] sm:$0xf]  ;;  %v559_v21 = vld [vmem:[%s916_s30 + $0x18] sm:$0xf0]  ;;  %v554_v23 = vor.u32 %v668_v15, %v551_v17  ;;  %v558_v24 = vor.u32 %v671_v19, %v557_v18 }
  0x2d   : > { %394 = vmatpush.bf16.msra.mxu0 %v582_v62  ;;  %v562_v25 = vor.u32 %v669_v20, %v559_v21 }
  0x2e   : > { %407 = vmatpush.bf16.msra.mxu1 %v586_v63  ;;  %420 = vmatpush.bf16.msra.mxu2 %v590_v0 }
  0x2f   : > { %433 = vmatpush.bf16.msra.mxu3 %v594_v4 }
  0x31   : > { %395 = vmatpush.bf16.msra.mxu0 %v566_v10 }
  0x32   : > { %408 = vmatpush.bf16.msra.mxu1 %v570_v11  ;;  %421 = vmatpush.bf16.msra.mxu2 %v574_v12 }
  0x33   : > { %434 = vmatpush.bf16.msra.mxu3 %v578_v16 }
  0x35   : > { %396 = vmatpush.bf16.msra.mxu0 %v550_v22 }
  0x36   : > { %409 = vmatpush.bf16.msra.mxu1 %v554_v23  ;;  %422 = vmatpush.bf16.msra.mxu2 %v558_v24 }
  0x37   : > { %435 = vmatpush.bf16.msra.mxu3 %v562_v25 }
  0x38   : > { %659 = vmatmul.msk.bf16.vlgmr.msra.gmra.mxu0 %vm372_vm1, %v201_v26 }
  0x39   : > { %660 = vmatmul.msk.bf16.vlgmr.msra.gmra.mxu1 %vm372_vm1, %v201_v26  ;;  %661 = vmatmul.msk.bf16.vlgmr.msra.gmra.mxu2 %vm372_vm1, %v201_v26 }
  0x3a   : > { %662 = vmatmul.msk.bf16.vlgmr.msra.gmra.mxu3 %vm372_vm1, %v201_v26 }
  0x88   : > { %v234_v27 = vpop.permute.xlu0 %233 }
  0xb5   : > { %v398_v28 = vpop.f32.mrf.mxu0 }
  0xb6   : > { %v411_v29 = vpop.f32.mrf.mxu1  ;;  %v399_v30 = vadd.f32 %v398_v28, %v234_v27 }
  0xb7   : > { %v412_v31 = vadd.f32 %v411_v29, %v234_v27 }
  0xb8   : > { %441 = vst [vmem:[%s188_s11] sm:$0xff] %v399_v30 }
  0xb9   : > { %442 = vst [vmem:[%s188_s11 + $0x8] sm:$0xff] %v412_v31 }
  0xbc   : > { %v424_v32 = vpop.f32.mrf.mxu2 }
  0xbd   : > { %v425_v33 = vadd.f32 %v424_v32, %v234_v27  ;;  %v437_v34 = vpop.f32.mrf.mxu3  ;;  %v400_v35 = vpop.f32.mrf.mxu0 }
  0xbe   : > { %v438_v36 = vadd.f32 %v437_v34, %v234_v27  ;;  %v413_v37 = vpop.f32.mrf.mxu1 }
  0xbf   : > { %443 = vst [vmem:[%s188_s11 + $0x10] sm:$0xff] %v425_v33 }
  0xc0   : > { %444 = vst [vmem:[%s188_s11 + $0x18] sm:$0xff] %v438_v36 }
  0xc1   : > { %782 = shalt.err (!%p779_p5)
}
  0xc2   : > { %698 = dma.vmem_to_hbm [thread:$0]  (%p896_p4), %s462_s23, 512, %s464_s26, %s446_s15  }
  0xc4   : > { %v426_v38 = vpop.f32.mrf.mxu2 }
  0xc5   : > { %v439_v39 = vpop.f32.mrf.mxu3 }
  0xc6 PF: > { %p704_p6 = scmp.ge.s32.totalorder %s833_s17, 2  ;;  %s475_s7 = sand.u32 1, %s813_s12  }
  0xc7   : > { %s476_s8 = scalar_lea.sflag [#allocation3], %s475_s7 }
  0xc8   : > { %p701_p7 = pnand %p704_p6, %p903_p8 }
  0xca   : > { %p702_p9 = pneg %p701_p7 }
  0xcc   : > { %808 = dma.done.wait (%p702_p9), %s476_s8, 512  }
  0xcd   : > { %810 = vsyncadd (%p702_p9), %s476_s8, 4294966784  ;;  %s16_s17 = sadd.s32 1, %s833_s17   ;;  %s1027_s12 = smov %s817_s13 }
  0xce   : > { %p13_p10 = scmp.ge.s32.totalorder %s16_s17, 4   ;;  %s1028_s13 = smov %s821_s14 }
  0xcf   : > { %s1029_s14 = smov %s909_s25  ;;  %s1030_s15 = smov %s829_s16 }
  0xd0   : > { %s1031_s16 = smov %s1033_s20  ;;  %15 = sbr.rel (!%p13_p10) target bundleno = 4 (0x4), region = 67 }
  0xd5   :  { %482 = vsyncpa [#allocation3], 1 }
  0xd6   :  { %484 = vsyncpa [#allocation3 + $0x1], 1 }

</bundles_post_ra>
